<compile_context>
chip_gen: v7x
topology: tpu7x:2x2x1
jax: 0.10.0
libtpu: 0.0.40
codegen_flags: <defaults>
</compile_context>

<pallas_src>
import jax
import jax.numpy as jnp
from jax import lax
from jax.experimental import pallas as pl
from jax.experimental.pallas import tpu as pltpu

_LANES = 128


def _drop_chunk_kernel(starts_ref, ends_ref, x_ref, o_ref):
    """Zero flat positions falling inside any [starts[j], ends[j]) range.

    starts_ref / ends_ref: scalar-prefetched SMEM int32[max_chunks], already
    scaled to flat (time*channels) index space; inactive slots have end==start.
    x_ref / o_ref: (block_rows, 128) VMEM tiles of the flattened waveform.
    """
    ri = pl.program_id(0)
    br, lanes = x_ref.shape
    row0 = ri * br
    flat = ((row0 + lax.broadcasted_iota(jnp.int32, (br, lanes), 0)) * lanes
            + lax.broadcasted_iota(jnp.int32, (br, lanes), 1))
    max_chunks = starts_ref.shape[0]

    def body(j, keep):
        s = starts_ref[j]
        e = ends_ref[j]
        return keep & ((flat < s) | (flat >= e))

    keep = lax.fori_loop(
        0, max_chunks, body,
        jnp.ones((br, lanes), dtype=jnp.bool_),
        unroll=True if max_chunks <= 32 else 8)

    # TODO(synk): noise_factor > 0 path (uniform-noise fill scaled by
    # compute_amplitude) not implemented; default noise_factor=0.0 zeroes.
    o_ref[...] = jnp.where(keep, x_ref[...], jnp.zeros((), x_ref.dtype))


def _drop_chunk_call(x2d, starts_flat, ends_flat, block_rows):
    """x2d: (rows, 128) flattened waveform slab. Returns masked slab."""
    rows, lanes = x2d.shape
    if rows <= block_rows:
        br = rows                              # single full-extent block
    else:
        # multiple of 8 for f32 sublane tiling (use >=16 for 16-bit dtypes)
        br = max(8, (block_rows // 8) * 8)
    grid = (pl.cdiv(rows, br),)
    return pl.pallas_call(
        _drop_chunk_kernel,
        out_shape=jax.ShapeDtypeStruct((rows, lanes), x2d.dtype),
        grid_spec=pltpu.PrefetchScalarGridSpec(
            num_scalar_prefetch=2,
            grid=grid,
            in_specs=[pl.BlockSpec((br, lanes), lambda i, s, e: (i, 0))],
            out_specs=pl.BlockSpec((br, lanes), lambda i, s, e: (i, 0)),
        ),
        compiler_params=pltpu.CompilerParams(
            dimension_semantics=("parallel",)),
    )(starts_flat, ends_flat, x2d)


class DropChunk:
    """JAX / Pallas port of the PyTorch DropChunk module."""

    def __init__(self, drop_length_low=100, drop_length_high=500,
                 drop_count_low_rate=2e-05, drop_count_high_rate=8e-05,
                 drop_start=0, drop_end=None, drop_prob=1, noise_factor=0.0):
        self.drop_length_low = drop_length_low
        self.drop_length_high = drop_length_high
        self.drop_count_low_rate = drop_count_low_rate
        self.drop_count_high_rate = drop_count_high_rate
        self.drop_start = drop_start
        self.drop_end = drop_end
        self.drop_prob = drop_prob
        self.noise_factor = noise_factor
        if drop_length_low > drop_length_high:
            raise ValueError('Low limit must not be more than high limit')
        if drop_end is not None and drop_end >= 0:
            if drop_start > drop_end:
                raise ValueError('Low limit must not be more than high limit')
            drop_range = drop_end - drop_start
            self.drop_length_low = min(drop_length_low, drop_range)
            self.drop_length_high = min(drop_length_high, drop_range)
        if noise_factor:
            # TODO(synk): noise replacement path not implemented in the kernel.
            raise NotImplementedError("noise_factor > 0 not supported")

    def __call__(self, key, waveforms, block_rows=4096):
        wave_length = waveforms.shape[0]
        squeeze_back = waveforms.ndim == 1
        x = waveforms if waveforms.ndim == 2 else waveforms[:, None]
        t, c = x.shape

        k_prob, k_times, k_len, k_start = jax.random.split(key, 4)

        # ---- chunk sampling (glue, matches PyTorch control flow) ----
        drop_count_high = int(self.drop_count_high_rate * wave_length)
        drop_count_low = int(self.drop_count_low_rate * wave_length)
        drop_count_low = max(1, drop_count_low)
        drop_count_high = max(drop_count_low, drop_count_high)
        max_chunks = drop_count_high  # static upper bound on chunk count

        drop_times = jax.random.randint(
            k_times, (), drop_count_low, drop_count_high + 1)
        lengths = jax.random.randint(
            k_len, (max_chunks,), self.drop_length_low,
            self.drop_length_high + 1)

        start_min = self.drop_start
        if start_min < 0:
            start_min += wave_length
        start_max = self.drop_end if self.drop_end is not None else wave_length
        if start_max < 0:
            start_max += wave_length
        start_max = start_max - jnp.max(lengths)
        # clamp so randint never sees high <= low (correctness fix)
        start_max = jnp.maximum(start_max, start_min)

        starts = jax.random.randint(
            k_start, (max_chunks,), start_min, start_max + 1)
        ends = starts + lengths

        # Fold "j < drop_times" into the bounds: inactive slots become empty.
        active = jnp.arange(max_chunks) < drop_times
        ends = jnp.where(active, ends, starts)

        # Scale to flat (time*channels) index space.
        starts_flat = (starts * c).astype(jnp.int32)
        ends_flat = (ends * c).astype(jnp.int32)

        # ---- layout: [T] / [T, C] -> contiguous (rows, 128) slab ----
        n = t * c
        xf = x.reshape(-1)                      # free (contiguous)
        n_pad = ((n + _LANES - 1) // _LANES) * _LANES
        if n_pad != n:
            # only when T*C is not a multiple of 128 (sub-128 element tail)
            xf = jnp.pad(xf, (0, n_pad - n))
        x2d = xf.reshape(n_pad // _LANES, _LANES)

        def _run(y):
            return _drop_chunk_call(y, starts_flat, ends_flat, block_rows)

        if self.drop_prob >= 1:
            out2d = _run(x2d)
        else:
            # drop_prob gating: skip the kernel (and its HBM traffic) entirely
            apply_drop = jax.random.uniform(k_prob, ()) <= self.drop_prob
            out2d = lax.cond(apply_drop, _run, lambda y: y, x2d)

        out = out2d.reshape(-1)
        if n_pad != n:
            out = out[:n]
        out = out.reshape(t, c)
        if squeeze_back:
            out = out[:, 0]
        return out


if __name__ == "__main__":
    key = jax.random.PRNGKey(0)
    k_data, k_drop, k_data1d, k_drop1d = jax.random.split(key, 4)

    # ---- [time, channels] input ----
    T, C = 2048, 4
    waveforms = jax.random.normal(k_data, (T, C), dtype=jnp.float32)

    dropper = DropChunk(drop_start=100, drop_end=1900, noise_factor=0.0)
    dropped = jax.block_until_ready(dropper(k_drop, waveforms))
    assert dropped.shape == waveforms.shape
    assert dropped.dtype == waveforms.dtype
    zero_rows = jnp.all(dropped == 0.0, axis=-1)
    same_rows = jnp.all(dropped == waveforms, axis=-1)
    assert bool(jnp.any(zero_rows)), "expected at least one dropped chunk"
    assert bool(jnp.all(zero_rows | same_rows)), "non-dropped samples changed"

    # Same key, smaller blocks -> multi-step grid must give identical result.
    dropped_small = jax.block_until_ready(
        dropper(k_drop, waveforms, block_rows=8))
    assert bool(jnp.all(dropped_small == dropped)), "tiling changed the result"

    # ---- [time]-only input, T not a multiple of 128 (pad + ragged paths) ----
    T1 = 3000
    wave1d = jax.random.normal(k_data1d, (T1,), dtype=jnp.float32)
    dropper1d = DropChunk()
    d1 = jax.block_until_ready(dropper1d(k_drop1d, wave1d))
    assert d1.shape == wave1d.shape
    z1 = d1 == 0.0
    s1 = d1 == wave1d
    assert bool(jnp.any(z1)), "expected at least one dropped chunk (1D)"
    assert bool(jnp.all(z1 | s1)), "non-dropped samples changed (1D)"
    d1b = jax.block_until_ready(dropper1d(k_drop1d, wave1d, block_rows=16))
    assert bool(jnp.all(d1b == d1)), "ragged-block tiling changed the result"

    # ---- drop_prob = 0: kernel bypassed, identity output ----
    no_drop = DropChunk(drop_prob=0.0)
    same = jax.block_until_ready(no_drop(k_drop, waveforms))
    assert bool(jnp.all(same == waveforms)), "drop_prob=0 must be identity"

    print("KERNEL_OK")
</pallas_src>

<mosaic_0001>
module attributes {stable_mosaic.version = 11 : i64} {
  func.func @_drop_chunk_kernel(%arg0: i32, %arg1: memref<1xi32, #tpu.memory_space<smem>>, %arg2: memref<1xi32, #tpu.memory_space<smem>>, %arg3: memref<64x128xf32, #tpu.memory_space<vmem>>, %arg4: memref<64x128xf32, #tpu.memory_space<vmem>>) attributes {dimension_semantics = [#tpu.dimension_semantics<parallel>], iteration_bounds = array<i64: 1>, scalar_prefetch = 2 : i64, scratch_operands = 0 : i64, tpu.core_type = #tpu.core_type<tc>, window_params = [{transform_indices = @transform_0, window_bounds = array<i64: 64, 128>}, {transform_indices = @transform_1, window_bounds = array<i64: 64, 128>}]} {
    %c64_i32 = arith.constant 64 : i32
    %0 = arith.muli %arg0, %c64_i32 : i32
    %1 = tpu.iota {dimensions = array<i32: 0>} : vector<64x128xi32>
    %2 = vector.broadcast %0 : i32 to vector<64x128xi32>
    %3 = arith.addi %2, %1 : vector<64x128xi32>
    %c128_i32 = arith.constant 128 : i32
    %4 = vector.broadcast %c128_i32 : i32 to vector<64x128xi32>
    %5 = arith.muli %3, %4 : vector<64x128xi32>
    %6 = tpu.iota {dimensions = array<i32: 1>} : vector<64x128xi32>
    %7 = arith.addi %5, %6 : vector<64x128xi32>
    %true = arith.constant true
    %8 = vector.broadcast %true : i1 to vector<64x128xi1>
    %c0_i32 = arith.constant 0 : i32
    %9 = arith.index_cast %c0_i32 : i32 to index
    %10 = memref.load %arg1[%9] : memref<1xi32, #tpu.memory_space<smem>>
    %11 = arith.index_cast %c0_i32 : i32 to index
    %12 = memref.load %arg2[%11] : memref<1xi32, #tpu.memory_space<smem>>
    %13 = vector.broadcast %10 : i32 to vector<64x128xi32>
    %14 = arith.cmpi slt, %7, %13 : vector<64x128xi32>
    %15 = vector.broadcast %12 : i32 to vector<64x128xi32>
    %16 = arith.cmpi sge, %7, %15 : vector<64x128xi32>
    %17 = arith.ori %14, %16 : vector<64x128xi1>
    %18 = arith.andi %8, %17 : vector<64x128xi1>
    %c1_i32 = arith.constant 1 : i32
    %c0 = arith.constant 0 : index
    %c0_0 = arith.constant 0 : index
    %19 = vector.load %arg3[%c0, %c0_0] : memref<64x128xf32, #tpu.memory_space<vmem>>, vector<64x128xf32>
    %cst = arith.constant 0.000000e+00 : f32
    %20 = vector.broadcast %cst : f32 to vector<64x128xf32>
    %21 = arith.select %18, %19, %20 : vector<64x128xi1>, vector<64x128xf32>
    %c0_1 = arith.constant 0 : index
    %c0_2 = arith.constant 0 : index
    %22 = vector.load %arg4[%c0_1, %c0_2] : memref<64x128xf32, #tpu.memory_space<vmem>>, vector<64x128xf32>
    tpu.vector_store %arg4[%c0_1, %c0_2], %21 {strides = array<i32>} : memref<64x128xf32, #tpu.memory_space<vmem>>, vector<64x128xf32>,
    return
  }
  func.func @transform_0(%arg0: i32, %arg1: memref<1xi32, #tpu.memory_space<smem>>, %arg2: memref<1xi32, #tpu.memory_space<smem>>) -> (i32, i32) {
    %c0_i32 = arith.constant 0 : i32
    %c0_i32_0 = arith.constant 0 : i32
    return %arg0, %c0_i32 : i32, i32
  }
  func.func @transform_1(%arg0: i32, %arg1: memref<1xi32, #tpu.memory_space<smem>>, %arg2: memref<1xi32, #tpu.memory_space<smem>>) -> (i32, i32) {
    %c0_i32 = arith.constant 0 : i32
    %c0_i32_0 = arith.constant 0 : i32
    return %arg0, %c0_i32 : i32, i32
  }
}

</mosaic_0001>

<bundles_post_ra>
// kernel: tpu_custom_call.1
= control target key start
LH: loop header
LB: loop body
LE: loop exit
PB: predicated region body
PF: predicated region fallthrough
CT: control target
= control target key end

     0   :  { %10 = vsyncpa [#allocation6], 0  ;;  %s265_s0 = inlined_call_operand.<no memory space> [shape: s32[1], index: 0, kind: input, shape index: {}]   ;;  %s266_s1 = inlined_call_operand.<no memory space> [shape: s32[1], index: 1, kind: input, shape index: {}]   ;;  %s267_s2 = inlined_call_operand.hbm [shape: f32[64,128], index: 2, kind: input, shape index: {}]   ;;  %s268_s3 = inlined_call_operand.hbm [shape: f32[64,128], index: 3, kind: output, shape index: {}]  }
   0x1   :  { %11 = vsyncpa [#allocation7], 0  ;;  %s185_s12 = smov [#allocation5]   ;;  %s137_s16 = scalar_lea.hbm %s267_s2, 1024 }
   0x2   :  { %s17_s13 = sshll.u32 %s185_s12, 4  ;;  %p138_p0 = scmp.ne.s32.totalorder %s267_s2, %s137_s16  ;;  %s18_s13 = int_to_ptr.vmem [resolvable:$true] %s17_s13 }
   0x3   :  { %p141_p1 = scmp.lt.u32.totalorder %s137_s16, %s267_s2 }
   0x5   :  { %p143_p2 = pnand %p141_p1, %p138_p0 }
   0x7   :  { %146 = shalt.err (!%p143_p2)
}
   0x8   :  { %s147_s21 = scalar_lea.vmem %s18_s13, 1024  ;;  %p152_p4 = scmp.lt.s32.totalorder %s18_s13, %s18_s13 }
   0x9   :  { %p148_p3 = scmp.ne.s32.totalorder %s18_s13, %s147_s21  ;;  %p153_p5 = scmp.lt.s32.totalorder %s147_s21, %s147_s21 }
   0xb   :  { %p154_p6 = por %p153_p5, %p152_p4 }
   0xd   :  { %p155_p7 = pnand %p154_p6, %p148_p3 }
   0xf   :  { %158 = shalt.err (!%p155_p7)
}
  0x10   :  { %s186_s22 = smov 128   ;;  %s187_s23 = smov 8  }
  0x11   :  { %23 = dma.hbm_to_vmem [thread:$0]  %s267_s2, 1024, %s18_s13, [#allocation6], %s186_s22, %s186_s22, %s187_s23  }
  0x12   :  { %181 = dma.done.wait [#allocation6], 1024  }
  0x13   :  { %182 = vsyncadd [#allocation6], 4294966272  ;;  %v28_v0 = vlaneseq  ;;  %v227_v3 = vstv %s265_s0  ;;  %v232_v8 = vstv %s266_s1  ;;  %v92_v15 = vld [vmem:[#allocation5] sm:$0xff]  ;;  %v93_v21 = vld [vmem:[#allocation5 + $0x8] sm:$0xff]  ;;  %s188_s0 = smov [#allocation8]  }
  0x14   :  { %v94_v27 = vld [vmem:[#allocation5 + $0x10] sm:$0xff]  ;;  %v95_v28 = vld [vmem:[#allocation5 + $0x18] sm:$0xff]  ;;  %v96_v30 = vld [vmem:[#allocation5 + $0x20] sm:$0xff]  ;;  %s121_s1 = sshll.u32 %s188_s0, 4  ;;  %s122_s1 = int_to_ptr.vmem [resolvable:$true] %s121_s1 }
  0x15   :  { %v29_v1 = vshrl.u32 %v28_v0, 7  ;;  %v55_v2 = vand.u32 127, %v28_v0  ;;  %v97_v34 = vld [vmem:[#allocation5 + $0x28] sm:$0xff]  ;;  %v98_v37 = vld [vmem:[#allocation5 + $0x30] sm:$0xff]  ;;  %v99_v41 = vld [vmem:[#allocation5 + $0x38] sm:$0xff]  ;;  %s159_s2 = scalar_lea.vmem %s122_s1, 1024  ;;  %p164_p9 = scmp.lt.s32.totalorder %s122_s1, %s122_s1 }
  0x16   :  { %p160_p8 = scmp.ne.s32.totalorder %s122_s1, %s159_s2  ;;  %p165_p10 = scmp.lt.s32.totalorder %s159_s2, %s159_s2 }
  0x17   :  { %v46_v4 = vmul.u32 128, %v29_v1  ;;  %v30_v5 = vadd.s32 8, %v29_v1  ;;  %v31_v6 = vadd.s32 16, %v29_v1  ;;  %v32_v7 = vadd.s32 24, %v29_v1 }
  0x18   :  { %v33_v9 = vadd.s32 32, %v29_v1  ;;  %v34_v10 = vadd.s32 40, %v29_v1  ;;  %v35_v11 = vadd.s32 48, %v29_v1  ;;  %v36_v18 = vadd.s32 56, %v29_v1  ;;  %p166_p11 = por %p165_p10, %p164_p9 }
  0x19   :  { %v56_v12 = vadd.s32 %v55_v2, %v46_v4  ;;  %v47_v13 = vmul.u32 128, %v30_v5  ;;  %v48_v14 = vmul.u32 128, %v31_v6 }
  0x1a   :  { %v49_v16 = vmul.u32 128, %v32_v7  ;;  %v50_v17 = vmul.u32 128, %v33_v9  ;;  %p167_p12 = pnand %p166_p11, %p160_p8 }
  0x1b   :  { %vm67_vm0 = vcmp.lt.s32.totalorder %v56_v12, %v227_v3  ;;  %vm76_vm1 = vcmp.ge.s32.totalorder %v56_v12, %v232_v8  ;;  %v57_v19 = vadd.s32 %v55_v2, %v47_v13  ;;  %v58_v20 = vadd.s32 %v55_v2, %v48_v14 }
  0x1c   :  { %vm84_vm2 = vmor %vm67_vm0, %vm76_vm1  ;;  %v59_v22 = vadd.s32 %v55_v2, %v49_v16  ;;  %v60_v23 = vadd.s32 %v55_v2, %v50_v17  ;;  %v51_v24 = vmul.u32 128, %v34_v10  ;;  %v52_v25 = vmul.u32 128, %v35_v11 }
  0x1d   :  { %v100_v26 = vsel %vm84_vm2, %v92_v15, 0.0  ;;  %vm68_vm3 = vcmp.lt.s32.totalorder %v57_v19, %v227_v3  ;;  %vm77_vm4 = vcmp.ge.s32.totalorder %v57_v19, %v232_v8  ;;  %vm69_vm5 = vcmp.lt.s32.totalorder %v58_v20, %v227_v3 }
  0x1e   :  { %108 = vst [vmem:[#allocation8] sm:$0xff] %v100_v26  ;;  %vm85_vm6 = vmor %vm68_vm3, %vm77_vm4  ;;  %vm78_vm7 = vcmp.ge.s32.totalorder %v58_v20, %v232_v8  ;;  %vm70_vm8 = vcmp.lt.s32.totalorder %v59_v22, %v227_v3  ;;  %vm79_vm9 = vcmp.ge.s32.totalorder %v59_v22, %v232_v8  ;;  %vm71_vm10 = vcmp.lt.s32.totalorder %v60_v23, %v227_v3 }
  0x1f   :  { %v101_v29 = vsel %vm85_vm6, %v93_v21, 0.0  ;;  %vm86_vm11 = vmor %vm69_vm5, %vm78_vm7  ;;  %vm80_vm12 = vcmp.ge.s32.totalorder %v60_v23, %v232_v8  ;;  %v61_v31 = vadd.s32 %v55_v2, %v51_v24  ;;  %v62_v32 = vadd.s32 %v55_v2, %v52_v25 }
  0x20   :  { %109 = vst [vmem:[#allocation8 + $0x8] sm:$0xff] %v101_v29  ;;  %v102_v33 = vsel %vm86_vm11, %v94_v27, 0.0  ;;  %vm87_vm13 = vmor %vm70_vm8, %vm79_vm9  ;;  %v53_v35 = vmul.u32 128, %v36_v18 }
  0x21   :  { %110 = vst [vmem:[#allocation8 + $0x10] sm:$0xff] %v102_v33  ;;  %v103_v36 = vsel %vm87_vm13, %v95_v28, 0.0  ;;  %vm88_vm14 = vmor %vm71_vm10, %vm80_vm12  ;;  %vm72_vm15 = vcmp.lt.s32.totalorder %v61_v31, %v227_v3  ;;  %vm81_vm0 = vcmp.ge.s32.totalorder %v61_v31, %v232_v8  ;;  %vm73_vm1 = vcmp.lt.s32.totalorder %v62_v32, %v227_v3 }
  0x22   :  { %111 = vst [vmem:[#allocation8 + $0x18] sm:$0xff] %v103_v36  ;;  %v104_v38 = vsel %vm88_vm14, %v96_v30, 0.0  ;;  %vm89_vm2 = vmor %vm72_vm15, %vm81_vm0  ;;  %vm82_vm3 = vcmp.ge.s32.totalorder %v62_v32, %v232_v8  ;;  %v63_v39 = vadd.s32 %v55_v2, %v53_v35 }
  0x23   :  { %112 = vst [vmem:[#allocation8 + $0x20] sm:$0xff] %v104_v38  ;;  %v105_v40 = vsel %vm89_vm2, %v97_v34, 0.0  ;;  %vm90_vm4 = vmor %vm73_vm1, %vm82_vm3 }
  0x24   :  { %113 = vst [vmem:[#allocation8 + $0x28] sm:$0xff] %v105_v40  ;;  %v106_v42 = vsel %vm90_vm4, %v98_v37, 0.0  ;;  %vm74_vm5 = vcmp.lt.s32.totalorder %v63_v39, %v227_v3  ;;  %vm83_vm6 = vcmp.ge.s32.totalorder %v63_v39, %v232_v8 }
  0x25   :  { %114 = vst [vmem:[#allocation8 + $0x30] sm:$0xff] %v106_v42  ;;  %vm91_vm7 = vmor %vm74_vm5, %vm83_vm6 }
  0x26   :  { %v107_v43 = vsel %vm91_vm7, %v99_v41, 0.0 }
  0x27   :  { %115 = vst [vmem:[#allocation8 + $0x38] sm:$0xff] %v107_v43 }
  0x28   :  { %170 = shalt.err (!%p167_p12)
}
  0x29   :  { %s171_s5 = scalar_lea.hbm %s268_s3, 1024 }
  0x2a   :  { %p172_p13 = scmp.ne.s32.totalorder %s268_s3, %s171_s5  ;;  %p175_p0 = scmp.lt.u32.totalorder %s171_s5, %s268_s3 }
  0x2c   :  { %p177_p1 = pnand %p175_p0, %p172_p13 }
  0x2e   :  { %180 = shalt.err (!%p177_p1)
}
  0x2f   :  { %127 = dma.vmem_to_hbm [thread:$0]  %s122_s1, 1024, %s268_s3, [#allocation7], %s186_s22, %s186_s22, %s187_s23  }
  0x30   :  { %183 = dma.done.wait [#allocation7], 1024  }
  0x31   :  { %184 = vsyncadd [#allocation7], 4294966272 }
  0x32   :  { %131 = vsyncpa [#allocation6], 1 }
  0x33   :  { %132 = vsyncpa [#allocation7], 1 }

</bundles_post_ra>
